<compile_context>
chip_gen: v7x
topology: tpu7x:2x2x1
jax: 0.10.0
libtpu: 0.0.40
codegen_flags: <defaults>
</compile_context>

<pallas_src>
import functools
import math

import jax
import jax.numpy as jnp
from jax.experimental import pallas as pl
from jax.experimental.pallas import tpu as pltpu


def _ewa_kernel(xpad_ref, xc_ref, wq_ref, wkv_ref, bq_ref, bkv_ref,
                wo_ref, bo_ref, wcls_ref, bcls_ref, g_ref, gt_ref,
                o_ref, k_ref, v_ref, attn_ref, *,
                win, ctx_len, tile_windows, head_dim):
    # xpad_ref : (1, Tp, E)   zero-padded input, one batch element
    # xc_ref   : (1, TW, E)   centre frames for this window tile
    # wq_ref   : (E, E)     bq_ref  : (1, E)
    # wkv_ref  : (E, 2E)    bkv_ref : (1, 2E)    fused K|V projection
    # wo_ref   : (E, E)     bo_ref  : (1, E)     attention out_proj
    # wcls_ref : (E, C)     bcls_ref: (1, C)     class head
    # g_ref    : (E, H)     gt_ref  : (H, E)     head-grouping matrices
    # o_ref    : (1, TW, C)
    # k_ref/v_ref : (Tp, E) VMEM scratch, persist across window tiles
    # attn_ref    : (TW, E) VMEM scratch
    wt = pl.program_id(1)
    emb = xpad_ref.shape[-1]

    # (A) Fused full-sequence K/V projection, once per batch element.  The
    # window-tile grid axis is "arbitrary", so the scratch persists across it.
    @pl.when(wt == 0)
    def _():
        kv = jnp.dot(xpad_ref[0], wkv_ref[...],
                     preferred_element_type=jnp.float32) + bkv_ref[...]
        k_ref[...] = kv[:, :emb]
        v_ref[...] = kv[:, emb:]

    # (B) Batched centre-query projection for the TW windows of this tile.
    q = jnp.dot(xc_ref[0], wq_ref[...],
                preferred_element_type=jnp.float32) + bq_ref[...]   # (TW, E)
    q = q * (1.0 / math.sqrt(head_dim))

    g = g_ref[...]                                                  # (E, H)
    gt = gt_ref[...]                                                # (H, E)
    base = wt * (tile_windows * win)

    # (C) Per-window attention over the (2W+1)-frame context.  Static unroll;
    # all elementwise work stays E-lane dense, heads folded via G / G^T.
    for j in range(tile_windows):
        start = base + j * win
        kwin = k_ref[pl.ds(start, ctx_len), :]                      # (L, E)
        vwin = v_ref[pl.ds(start, ctx_len), :]                      # (L, E)
        qj = q[j:j + 1, :]                                          # (1, E)
        s = jnp.dot(qj * kwin, g,
                    preferred_element_type=jnp.float32)             # (L, H)
        s = s - jnp.max(s, axis=0, keepdims=True)
        p = jnp.exp(s)
        p = p * pl.reciprocal(jnp.sum(p, axis=0, keepdims=True), approx=True)
        p_full = jnp.dot(p, gt,
                         preferred_element_type=jnp.float32)        # (L, E)
        attn_ref[pl.ds(j, 1), :] = jnp.sum(p_full * vwin, axis=0, keepdims=True)

    # (D) Batched out_proj + class head + log_softmax for the whole tile.
    feat = jnp.dot(attn_ref[...], wo_ref[...],
                   preferred_element_type=jnp.float32) + bo_ref[...]      # (TW, E)
    logits = jnp.dot(feat, wcls_ref[...],
                     preferred_element_type=jnp.float32) + bcls_ref[...]  # (TW, C)
    z = logits - jnp.max(logits, axis=-1, keepdims=True)
    lse = jnp.log(jnp.sum(jnp.exp(z), axis=-1, keepdims=True))
    o_ref[0] = (z - lse).astype(o_ref.dtype)

    # TODO(synk): nn.Dropout / attention-weight dropout treated as identity
    # (eval mode); training-mode parity would need pltpu.prng_random_bits.


def exp_window_attention(x, x_len, in_proj_w, in_proj_b, out_proj_w,
                         out_proj_b, cls_w, cls_b, *, num_heads, window_size,
                         n_class):
    """x: (B, T, E) float32.  x_len kept for API parity (unused in forward)."""
    del x_len
    B, T, E = x.shape
    W = window_size
    L = 2 * W + 1
    H = num_heads
    dh = E // H
    C = n_class

    NW = len(range(W, T, W))                      # windows the torch loop runs
    const_row = -math.log(float(C))               # log_softmax of an all-zero row
    if NW == 0:
        return jnp.full((B * T, C), const_row, dtype=x.dtype)

    # Window tiling: TW windows per kernel step.  A tiled (non-full) second-
    # minor BlockSpec dim must be a multiple of 8, hence TW = 8 when tiling.
    TW = NW if NW <= 8 else 8
    NWT = -(-NW // TW)
    NW_pad = NWT * TW

    # Padded time extent must cover the context of every (possibly padded)
    # window; round up to a sublane multiple.  Padded rows are zeros, padded
    # windows produce garbage rows that the wrapper discards.
    Tp = max(T + W, NW_pad * W + W + 1)
    Tp = -(-Tp // 8) * 8
    xp = jnp.pad(x, ((0, 0), (0, Tp - T), (0, 0)))                  # (B, Tp, E)

    # Centre frames f = W, 2W, ..., NW*W gathered with a static strided slice.
    xc = x[:, W:NW * W + 1:W, :]                                    # (B, NW, E)
    if NW_pad > NW:
        xc = jnp.pad(xc, ((0, 0), (0, NW_pad - NW), (0, 0)))

    # Weights pre-transposed to (in, out); K|V fused into one (E, 2E) matrix.
    wq_t = jnp.transpose(in_proj_w[:E])                                   # (E, E)
    wkv_t = jnp.concatenate([jnp.transpose(in_proj_w[E:2 * E]),
                             jnp.transpose(in_proj_w[2 * E:])], axis=1)   # (E, 2E)
    bq = in_proj_b[:E].reshape(1, E)
    bkv = jnp.concatenate([in_proj_b[E:2 * E],
                           in_proj_b[2 * E:]]).reshape(1, 2 * E)
    wo_t = jnp.transpose(out_proj_w)                                      # (E, E)
    bo = out_proj_b.reshape(1, E)
    wc_t = jnp.transpose(cls_w)                                           # (E, C)
    bc = cls_b.reshape(1, C)

    # Head-grouping matrices: lane-dense per-head reduction / broadcast.
    grp = (jnp.arange(E)[:, None] // dh) == jnp.arange(H)[None, :]
    g = grp.astype(jnp.float32)                                           # (E, H)
    gt = jnp.transpose(g)                                                 # (H, E)

    kernel = functools.partial(_ewa_kernel, win=W, ctx_len=L,
                               tile_windows=TW, head_dim=dh)

    flops = B * (2 * Tp * E * 2 * E                       # fused K/V projection
                 + NW_pad * (2 * E * E                    # centre-q projection
                             + 2 * E * E                  # out_proj
                             + 2 * E * C                  # class head
                             + 4 * L * E * H              # G / G^T matmuls
                             + 3 * L * E))                # elementwise attention
    cost = pl.CostEstimate(
        flops=int(flops),
        transcendentals=int(B * NW_pad * (L * H + H + C)),
        bytes_accessed=int(4 * (xp.size + xc.size + wq_t.size + wkv_t.size
                                + wo_t.size + wc_t.size + g.size + gt.size
                                + bq.size + bkv.size + bo.size + bc.size
                                + B * NW_pad * C)))

    # Explicit VMEM budget (v7x has only 64 MiB; default scoped limit 32 MiB).
    blk = 4 * (Tp * E + TW * E + E * E + 2 * E * E + E + 2 * E + E * E + E
               + E * C + C + E * H + H * E + TW * C)     # per-buffer block bytes
    scr = 4 * (2 * Tp * E + TW * E)                      # scratch bytes
    vmem_limit = int(min(max(4 * blk + scr, 8 << 20), 48 << 20))

    logp = pl.pallas_call(
        kernel,
        out_shape=jax.ShapeDtypeStruct((B, NW_pad, C), x.dtype),
        grid_spec=pltpu.PrefetchScalarGridSpec(
            num_scalar_prefetch=0,
            grid=(B, NWT),
            in_specs=[
                pl.BlockSpec((1, Tp, E), lambda b, t: (b, 0, 0)),      # x_pad
                pl.BlockSpec((1, TW, E), lambda b, t: (b, t, 0)),      # centres
                pl.BlockSpec((E, E), lambda b, t: (0, 0)),             # wq
                pl.BlockSpec((E, 2 * E), lambda b, t: (0, 0)),         # wkv
                pl.BlockSpec((1, E), lambda b, t: (0, 0)),             # bq
                pl.BlockSpec((1, 2 * E), lambda b, t: (0, 0)),         # bkv
                pl.BlockSpec((E, E), lambda b, t: (0, 0)),             # wo
                pl.BlockSpec((1, E), lambda b, t: (0, 0)),             # bo
                pl.BlockSpec((E, C), lambda b, t: (0, 0)),             # wcls
                pl.BlockSpec((1, C), lambda b, t: (0, 0)),             # bcls
                pl.BlockSpec((E, H), lambda b, t: (0, 0)),             # G
                pl.BlockSpec((H, E), lambda b, t: (0, 0)),             # G^T
            ],
            out_specs=pl.BlockSpec((1, TW, C), lambda b, t: (b, t, 0)),
            scratch_shapes=[pltpu.VMEM((Tp, E), jnp.float32),   # K (full seq)
                            pltpu.VMEM((Tp, E), jnp.float32),   # V (full seq)
                            pltpu.VMEM((TW, E), jnp.float32)],  # attn rows
        ),
        compiler_params=pltpu.CompilerParams(
            dimension_semantics=("parallel", "arbitrary"),
            vmem_limit_bytes=vmem_limit),
        cost_estimate=cost,
    )(xp, xc, wq_t, wkv_t, bq, bkv, wo_t, bo, wc_t, bc, g, gt)

    # Rows the torch loop never writes stay zero -> log_softmax = -log(C);
    # computed rows land at the static stride-W positions 0, W, ..., (NW-1)*W.
    out = jnp.full((B, T, C), const_row, dtype=x.dtype)
    out = out.at[:, :NW * W:W, :].set(logp[:, :NW, :])
    return out.reshape(B * T, C)


def _ref_forward(x, in_proj_w, in_proj_b, out_proj_w, out_proj_b, cls_w, cls_b,
                 *, num_heads, window_size, n_class):
    """Pure-JAX mirror of ExpWindowAttention.forward (eval mode)."""
    B, T, E = x.shape
    W, H = window_size, num_heads
    L, dh = 2 * W + 1, E // num_heads
    hp = jax.lax.Precision.HIGHEST
    xp = jnp.pad(x, ((0, 0), (0, W), (0, 0)))
    final = jnp.zeros((B, T, n_class), jnp.float32)
    for f in range(W, T, W):
        s = f - W
        ctx = xp[:, s:s + L, :]                                       # (B, L, E)
        q = jnp.einsum('ble,fe->blf', ctx, in_proj_w[:E], precision=hp) + in_proj_b[:E]
        k = jnp.einsum('ble,fe->blf', ctx, in_proj_w[E:2 * E], precision=hp) + in_proj_b[E:2 * E]
        v = jnp.einsum('ble,fe->blf', ctx, in_proj_w[2 * E:], precision=hp) + in_proj_b[2 * E:]
        q = q / math.sqrt(dh)
        qh = q.reshape(B, L, H, dh)
        kh = k.reshape(B, L, H, dh)
        vh = v.reshape(B, L, H, dh)
        scores = jnp.einsum('bqhd,bkhd->bhqk', qh, kh, precision=hp)
        attn = jax.nn.softmax(scores, axis=-1)
        o = jnp.einsum('bhqk,bkhd->bqhd', attn, vh, precision=hp).reshape(B, L, E)
        feat = o[:, W, :]
        feat = jnp.einsum('be,fe->bf', feat, out_proj_w, precision=hp) + out_proj_b
        probs = jnp.einsum('be,ce->bc', feat, cls_w, precision=hp) + cls_b
        final = final.at[:, s, :].set(probs)
    return jax.nn.log_softmax(final.reshape(B * T, n_class), axis=-1)


if __name__ == "__main__":
    # Small shapes consistent with the module (input_dim divisible by num_heads).
    B, T, E = 2, 16, 32          # batch, max_len, input_dim
    H, W, C = 4, 5, 2            # num_heads, window_size, n_class

    key = jax.random.PRNGKey(0)
    kx, k1, k2, k3, k4, k5, k6 = jax.random.split(key, 7)

    x = jax.random.normal(kx, (B, T, E), dtype=jnp.float32)
    x_len = jnp.array([T, T - 4], dtype=jnp.int32)   # unused by forward (parity only)

    s = 1.0 / math.sqrt(E)
    in_proj_w = jax.random.uniform(k1, (3 * E, E), minval=-s, maxval=s, dtype=jnp.float32)
    in_proj_b = jax.random.uniform(k2, (3 * E,), minval=-s, maxval=s, dtype=jnp.float32)
    out_proj_w = jax.random.uniform(k3, (E, E), minval=-s, maxval=s, dtype=jnp.float32)
    out_proj_b = jax.random.uniform(k4, (E,), minval=-s, maxval=s, dtype=jnp.float32)
    cls_w = jax.random.uniform(k5, (C, E), minval=-s, maxval=s, dtype=jnp.float32)
    cls_b = jax.random.uniform(k6, (C,), minval=-s, maxval=s, dtype=jnp.float32)

    out = exp_window_attention(x, x_len, in_proj_w, in_proj_b, out_proj_w,
                               out_proj_b, cls_w, cls_b,
                               num_heads=H, window_size=W, n_class=C)
    jax.block_until_ready(out)
    assert out.shape == (B * T, C)

    ref = _ref_forward(x, in_proj_w, in_proj_b, out_proj_w, out_proj_b,
                       cls_w, cls_b, num_heads=H, window_size=W, n_class=C)
    err = float(jnp.max(jnp.abs(out - ref)))
    # Tolerance leaves headroom for the approximate EUP reciprocal used in the
    # attention-softmax normalisation (exact-divide path matches to ~1e-6).
    assert err < 5e-3, f"max abs error vs reference: {err}"
    print("KERNEL_OK")
</pallas_src>

<mosaic_0001>
module attributes {stable_mosaic.version = 11 : i64} {
  func.func @_ewa_kernel(%arg0: i32, %arg1: i32, %arg2: memref<1x24x32xf32, #tpu.memory_space<vmem>>, %arg3: memref<1x3x32xf32, #tpu.memory_space<vmem>>, %arg4: memref<32x32xf32, #tpu.memory_space<vmem>>, %arg5: memref<32x64xf32, #tpu.memory_space<vmem>>, %arg6: memref<1x32xf32, #tpu.memory_space<vmem>>, %arg7: memref<1x64xf32, #tpu.memory_space<vmem>>, %arg8: memref<32x32xf32, #tpu.memory_space<vmem>>, %arg9: memref<1x32xf32, #tpu.memory_space<vmem>>, %arg10: memref<32x2xf32, #tpu.memory_space<vmem>>, %arg11: memref<1x2xf32, #tpu.memory_space<vmem>>, %arg12: memref<32x4xf32, #tpu.memory_space<vmem>>, %arg13: memref<4x32xf32, #tpu.memory_space<vmem>>, %arg14: memref<1x3x2xf32, #tpu.memory_space<vmem>>, %arg15: memref<24x32xf32, #tpu.memory_space<vmem>>, %arg16: memref<24x32xf32, #tpu.memory_space<vmem>>, %arg17: memref<3x32xf32, #tpu.memory_space<vmem>>) attributes {dimension_semantics = [#tpu.dimension_semantics<parallel>, #tpu.dimension_semantics<arbitrary>], iteration_bounds = array<i64: 2, 1>, scalar_prefetch = 0 : i64, scratch_operands = 3 : i64, tpu.core_type = #tpu.core_type<tc>, window_params = [{transform_indices = @transform_0, window_bounds = array<i64: 1, 24, 32>}, {transform_indices = @transform_1, window_bounds = array<i64: 1, 3, 32>}, {pipeline_mode = #tpu.pipeline_mode<synchronous>, transform_indices = @transform_2, window_bounds = array<i64: 32, 32>}, {pipeline_mode = #tpu.pipeline_mode<synchronous>, transform_indices = @transform_3, window_bounds = array<i64: 32, 64>}, {pipeline_mode = #tpu.pipeline_mode<synchronous>, transform_indices = @transform_4, window_bounds = array<i64: 1, 32>}, {pipeline_mode = #tpu.pipeline_mode<synchronous>, transform_indices = @transform_5, window_bounds = array<i64: 1, 64>}, {pipeline_mode = #tpu.pipeline_mode<synchronous>, transform_indices = @transform_6, window_bounds = array<i64: 32, 32>}, {pipeline_mode = #tpu.pipeline_mode<synchronous>, transform_indices = @transform_7, window_bounds = array<i64: 1, 32>}, {pipeline_mode = #tpu.pipeline_mode<synchronous>, transform_indices = @transform_8, window_bounds = array<i64: 32, 2>}, {pipeline_mode = #tpu.pipeline_mode<synchronous>, transform_indices = @transform_9, window_bounds = array<i64: 1, 2>}, {pipeline_mode = #tpu.pipeline_mode<synchronous>, transform_indices = @transform_10, window_bounds = array<i64: 32, 4>}, {pipeline_mode = #tpu.pipeline_mode<synchronous>, transform_indices = @transform_11, window_bounds = array<i64: 4, 32>}, {transform_indices = @transform_12, window_bounds = array<i64: 1, 3, 2>}]} {
    %c0_i32 = arith.constant 0 : i32
    %0 = arith.cmpi eq, %arg1, %c0_i32 : i32
    %1 = arith.extui %0 : i1 to i32
    %c0_i32_0 = arith.constant 0 : i32
    %2 = arith.cmpi ne, %1, %c0_i32_0 : i32
    scf.if %2 {
      %c0_55 = arith.constant 0 : index
      %c0_56 = arith.constant 0 : index
      %c0_57 = arith.constant 0 : index
      %111 = vector.load %arg2[%c0_55, %c0_56, %c0_57] : memref<1x24x32xf32, #tpu.memory_space<vmem>>, vector<1x24x32xf32>
      %112 = vector.shape_cast %111 : vector<1x24x32xf32> to vector<24x32xf32>
      %c0_58 = arith.constant 0 : index
      %c0_59 = arith.constant 0 : index
      %113 = vector.load %arg5[%c0_58, %c0_59] : memref<32x64xf32, #tpu.memory_space<vmem>>, vector<32x64xf32>
      %cst_60 = arith.constant dense<0.000000e+00> : vector<24x64xf32>
      %114 = tpu.matmul %112, %113, %cst_60 {dimension_numbers = #tpu.dot_dimension_numbers<[1], [0], [0], [1], [0, 0, 1, 1], [], []>} : vector<24x32xf32>, vector<32x64xf32>, vector<24x64xf32> -> vector<24x64xf32>
      %c0_61 = arith.constant 0 : index
      %c0_62 = arith.constant 0 : index
      %115 = vector.load %arg7[%c0_61, %c0_62] : memref<1x64xf32, #tpu.memory_space<vmem>>, vector<1x64xf32>
      %116 = vector.broadcast %115 : vector<1x64xf32> to vector<24x64xf32>
      %117 = arith.addf %114, %116 : vector<24x64xf32>
      %118 = vector.extract_strided_slice %117 {offsets = [0, 0], sizes = [24, 32], strides = [1, 1]} : vector<24x64xf32> to vector<24x32xf32>
      %c0_63 = arith.constant 0 : index
      %c0_64 = arith.constant 0 : index
      %119 = vector.load %arg15[%c0_63, %c0_64] : memref<24x32xf32, #tpu.memory_space<vmem>>, vector<24x32xf32>
      tpu.vector_store %arg15[%c0_63, %c0_64], %118 {strides = array<i32>} : memref<24x32xf32, #tpu.memory_space<vmem>>, vector<24x32xf32>,
      %120 = vector.extract_strided_slice %117 {offsets = [0, 32], sizes = [24, 32], strides = [1, 1]} : vector<24x64xf32> to vector<24x32xf32>
      %c0_65 = arith.constant 0 : index
      %c0_66 = arith.constant 0 : index
      %121 = vector.load %arg16[%c0_65, %c0_66] : memref<24x32xf32, #tpu.memory_space<vmem>>, vector<24x32xf32>
      tpu.vector_store %arg16[%c0_65, %c0_66], %120 {strides = array<i32>} : memref<24x32xf32, #tpu.memory_space<vmem>>, vector<24x32xf32>,
    } else {
    }
    %c0 = arith.constant 0 : index
    %c0_1 = arith.constant 0 : index
    %c0_2 = arith.constant 0 : index
    %3 = vector.load %arg3[%c0, %c0_1, %c0_2] : memref<1x3x32xf32, #tpu.memory_space<vmem>>, vector<1x3x32xf32>
    %4 = vector.shape_cast %3 : vector<1x3x32xf32> to vector<3x32xf32>
    %c0_3 = arith.constant 0 : index
    %c0_4 = arith.constant 0 : index
    %5 = vector.load %arg4[%c0_3, %c0_4] : memref<32x32xf32, #tpu.memory_space<vmem>>, vector<32x32xf32>
    %cst = arith.constant dense<0.000000e+00> : vector<3x32xf32>
    %6 = tpu.matmul %4, %5, %cst {dimension_numbers = #tpu.dot_dimension_numbers<[1], [0], [0], [1], [0, 0, 1, 1], [], []>} : vector<3x32xf32>, vector<32x32xf32>, vector<3x32xf32> -> vector<3x32xf32>
    %c0_5 = arith.constant 0 : index
    %c0_6 = arith.constant 0 : index
    %7 = vector.load %arg6[%c0_5, %c0_6] : memref<1x32xf32, #tpu.memory_space<vmem>>, vector<1x32xf32>
    %8 = vector.broadcast %7 : vector<1x32xf32> to vector<3x32xf32>
    %9 = arith.addf %6, %8 : vector<3x32xf32>
    %cst_7 = arith.constant 0.353553385 : f32
    %10 = vector.broadcast %cst_7 : f32 to vector<3x32xf32>
    %11 = arith.mulf %9, %10 : vector<3x32xf32>
    %c0_8 = arith.constant 0 : index
    %c0_9 = arith.constant 0 : index
    %12 = vector.load %arg12[%c0_8, %c0_9] : memref<32x4xf32, #tpu.memory_space<vmem>>, vector<32x4xf32>
    %c0_10 = arith.constant 0 : index
    %c0_11 = arith.constant 0 : index
    %13 = vector.load %arg13[%c0_10, %c0_11] : memref<4x32xf32, #tpu.memory_space<vmem>>, vector<4x32xf32>
    %c15_i32 = arith.constant 15 : i32
    %14 = arith.muli %arg1, %c15_i32 : i32
    %c0_i32_12 = arith.constant 0 : i32
    %15 = arith.addi %14, %c0_i32_12 : i32
    %16 = arith.index_cast %15 : i32 to index
    %c0_13 = arith.constant 0 : index
    %17 = vector.load %arg15[%16, %c0_13] : memref<24x32xf32, #tpu.memory_space<vmem>>, vector<11x32xf32>
    %18 = arith.index_cast %15 : i32 to index
    %c0_14 = arith.constant 0 : index
    %19 = vector.load %arg16[%18, %c0_14] : memref<24x32xf32, #tpu.memory_space<vmem>>, vector<11x32xf32>
    %20 = vector.extract_strided_slice %11 {offsets = [0, 0], sizes = [1, 32], strides = [1, 1]} : vector<3x32xf32> to vector<1x32xf32>
    %21 = vector.broadcast %20 : vector<1x32xf32> to vector<11x32xf32>
    %22 = arith.mulf %21, %17 : vector<11x32xf32>
    %cst_15 = arith.constant dense<0.000000e+00> : vector<11x4xf32>
    %23 = tpu.matmul %22, %12, %cst_15 {dimension_numbers = #tpu.dot_dimension_numbers<[1], [0], [0], [1], [0, 0, 1, 1], [], []>} : vector<11x32xf32>, vector<32x4xf32>, vector<11x4xf32> -> vector<11x4xf32>
    %cst_16 = arith.constant dense<0xFF800000> : vector<4xf32>
    %24 = vector.multi_reduction <maximumf>, %23, %cst_16 [0] : vector<11x4xf32> to vector<4xf32>
    %25 = vector.shape_cast %24 : vector<4xf32> to vector<1x4xf32>
    %26 = vector.broadcast %25 : vector<1x4xf32> to vector<11x4xf32>
    %27 = arith.subf %23, %26 : vector<11x4xf32>
    %28 = math.exp %27 : vector<11x4xf32>
    %cst_17 = arith.constant dense<0.000000e+00> : vector<4xf32>
    %29 = vector.multi_reduction <add>, %28, %cst_17 [0] : vector<11x4xf32> to vector<4xf32>
    %30 = vector.shape_cast %29 : vector<4xf32> to vector<1x4xf32>
    %31 = tpu.reciprocal %30 {approx = true} : vector<1x4xf32> -> vector<1x4xf32>
    %32 = vector.broadcast %31 : vector<1x4xf32> to vector<11x4xf32>
    %33 = arith.mulf %28, %32 : vector<11x4xf32>
    %cst_18 = arith.constant dense<0.000000e+00> : vector<11x32xf32>
    %34 = tpu.matmul %33, %13, %cst_18 {dimension_numbers = #tpu.dot_dimension_numbers<[1], [0], [0], [1], [0, 0, 1, 1], [], []>} : vector<11x4xf32>, vector<4x32xf32>, vector<11x32xf32> -> vector<11x32xf32>
    %35 = arith.mulf %34, %19 : vector<11x32xf32>
    %cst_19 = arith.constant dense<0.000000e+00> : vector<32xf32>
    %36 = vector.multi_reduction <add>, %35, %cst_19 [0] : vector<11x32xf32> to vector<32xf32>
    %37 = vector.shape_cast %36 : vector<32xf32> to vector<1x32xf32>
    %c0_20 = arith.constant 0 : index
    %c0_21 = arith.constant 0 : index
    %38 = vector.load %arg17[%c0_20, %c0_21] : memref<3x32xf32, #tpu.memory_space<vmem>>, vector<1x32xf32>
    tpu.vector_store %arg17[%c0_20, %c0_21], %37 {strides = array<i32>} : memref<3x32xf32, #tpu.memory_space<vmem>>, vector<1x32xf32>,
    %c5_i32 = arith.constant 5 : i32
    %39 = arith.addi %14, %c5_i32 : i32
    %40 = arith.index_cast %39 : i32 to index
    %c0_22 = arith.constant 0 : index
    %41 = vector.load %arg15[%40, %c0_22] : memref<24x32xf32, #tpu.memory_space<vmem>>, vector<11x32xf32>
    %42 = arith.index_cast %39 : i32 to index
    %c0_23 = arith.constant 0 : index
    %43 = vector.load %arg16[%42, %c0_23] : memref<24x32xf32, #tpu.memory_space<vmem>>, vector<11x32xf32>
    %44 = vector.extract_strided_slice %11 {offsets = [1, 0], sizes = [1, 32], strides = [1, 1]} : vector<3x32xf32> to vector<1x32xf32>
    %45 = vector.broadcast %44 : vector<1x32xf32> to vector<11x32xf32>
    %46 = arith.mulf %45, %41 : vector<11x32xf32>
    %cst_24 = arith.constant dense<0.000000e+00> : vector<11x4xf32>
    %47 = tpu.matmul %46, %12, %cst_24 {dimension_numbers = #tpu.dot_dimension_numbers<[1], [0], [0], [1], [0, 0, 1, 1], [], []>} : vector<11x32xf32>, vector<32x4xf32>, vector<11x4xf32> -> vector<11x4xf32>
    %cst_25 = arith.constant dense<0xFF800000> : vector<4xf32>
    %48 = vector.multi_reduction <maximumf>, %47, %cst_25 [0] : vector<11x4xf32> to vector<4xf32>
    %49 = vector.shape_cast %48 : vector<4xf32> to vector<1x4xf32>
    %50 = vector.broadcast %49 : vector<1x4xf32> to vector<11x4xf32>
    %51 = arith.subf %47, %50 : vector<11x4xf32>
    %52 = math.exp %51 : vector<11x4xf32>
    %cst_26 = arith.constant dense<0.000000e+00> : vector<4xf32>
    %53 = vector.multi_reduction <add>, %52, %cst_26 [0] : vector<11x4xf32> to vector<4xf32>
    %54 = vector.shape_cast %53 : vector<4xf32> to vector<1x4xf32>
    %55 = tpu.reciprocal %54 {approx = true} : vector<1x4xf32> -> vector<1x4xf32>
    %56 = vector.broadcast %55 : vector<1x4xf32> to vector<11x4xf32>
    %57 = arith.mulf %52, %56 : vector<11x4xf32>
    %cst_27 = arith.constant dense<0.000000e+00> : vector<11x32xf32>
    %58 = tpu.matmul %57, %13, %cst_27 {dimension_numbers = #tpu.dot_dimension_numbers<[1], [0], [0], [1], [0, 0, 1, 1], [], []>} : vector<11x4xf32>, vector<4x32xf32>, vector<11x32xf32> -> vector<11x32xf32>
    %59 = arith.mulf %58, %43 : vector<11x32xf32>
    %cst_28 = arith.constant dense<0.000000e+00> : vector<32xf32>
    %60 = vector.multi_reduction <add>, %59, %cst_28 [0] : vector<11x32xf32> to vector<32xf32>
    %61 = vector.shape_cast %60 : vector<32xf32> to vector<1x32xf32>
    %c1 = arith.constant 1 : index
    %c0_29 = arith.constant 0 : index
    %62 = vector.load %arg17[%c1, %c0_29] : memref<3x32xf32, #tpu.memory_space<vmem>>, vector<1x32xf32>
    tpu.vector_store %arg17[%c1, %c0_29], %61 {strides = array<i32>} : memref<3x32xf32, #tpu.memory_space<vmem>>, vector<1x32xf32>,
    %c10_i32 = arith.constant 10 : i32
    %63 = arith.addi %14, %c10_i32 : i32
    %64 = arith.index_cast %63 : i32 to index
    %c0_30 = arith.constant 0 : index
    %65 = vector.load %arg15[%64, %c0_30] : memref<24x32xf32, #tpu.memory_space<vmem>>, vector<11x32xf32>
    %66 = arith.index_cast %63 : i32 to index
    %c0_31 = arith.constant 0 : index
    %67 = vector.load %arg16[%66, %c0_31] : memref<24x32xf32, #tpu.memory_space<vmem>>, vector<11x32xf32>
    %68 = vector.extract_strided_slice %11 {offsets = [2, 0], sizes = [1, 32], strides = [1, 1]} : vector<3x32xf32> to vector<1x32xf32>
    %69 = vector.broadcast %68 : vector<1x32xf32> to vector<11x32xf32>
    %70 = arith.mulf %69, %65 : vector<11x32xf32>
    %cst_32 = arith.constant dense<0.000000e+00> : vector<11x4xf32>
    %71 = tpu.matmul %70, %12, %cst_32 {dimension_numbers = #tpu.dot_dimension_numbers<[1], [0], [0], [1], [0, 0, 1, 1], [], []>} : vector<11x32xf32>, vector<32x4xf32>, vector<11x4xf32> -> vector<11x4xf32>
    %cst_33 = arith.constant dense<0xFF800000> : vector<4xf32>
    %72 = vector.multi_reduction <maximumf>, %71, %cst_33 [0] : vector<11x4xf32> to vector<4xf32>
    %73 = vector.shape_cast %72 : vector<4xf32> to vector<1x4xf32>
    %74 = vector.broadcast %73 : vector<1x4xf32> to vector<11x4xf32>
    %75 = arith.subf %71, %74 : vector<11x4xf32>
    %76 = math.exp %75 : vector<11x4xf32>
    %cst_34 = arith.constant dense<0.000000e+00> : vector<4xf32>
    %77 = vector.multi_reduction <add>, %76, %cst_34 [0] : vector<11x4xf32> to vector<4xf32>
    %78 = vector.shape_cast %77 : vector<4xf32> to vector<1x4xf32>
    %79 = tpu.reciprocal %78 {approx = true} : vector<1x4xf32> -> vector<1x4xf32>
    %80 = vector.broadcast %79 : vector<1x4xf32> to vector<11x4xf32>
    %81 = arith.mulf %76, %80 : vector<11x4xf32>
    %cst_35 = arith.constant dense<0.000000e+00> : vector<11x32xf32>
    %82 = tpu.matmul %81, %13, %cst_35 {dimension_numbers = #tpu.dot_dimension_numbers<[1], [0], [0], [1], [0, 0, 1, 1], [], []>} : vector<11x4xf32>, vector<4x32xf32>, vector<11x32xf32> -> vector<11x32xf32>
    %83 = arith.mulf %82, %67 : vector<11x32xf32>
    %cst_36 = arith.constant dense<0.000000e+00> : vector<32xf32>
    %84 = vector.multi_reduction <add>, %83, %cst_36 [0] : vector<11x32xf32> to vector<32xf32>
    %85 = vector.shape_cast %84 : vector<32xf32> to vector<1x32xf32>
    %c2 = arith.constant 2 : index
    %c0_37 = arith.constant 0 : index
    %86 = vector.load %arg17[%c2, %c0_37] : memref<3x32xf32, #tpu.memory_space<vmem>>, vector<1x32xf32>
    tpu.vector_store %arg17[%c2, %c0_37], %85 {strides = array<i32>} : memref<3x32xf32, #tpu.memory_space<vmem>>, vector<1x32xf32>,
    %c0_38 = arith.constant 0 : index
    %c0_39 = arith.constant 0 : index
    %87 = vector.load %arg17[%c0_38, %c0_39] : memref<3x32xf32, #tpu.memory_space<vmem>>, vector<3x32xf32>
    %c0_40 = arith.constant 0 : index
    %c0_41 = arith.constant 0 : index
    %88 = vector.load %arg8[%c0_40, %c0_41] : memref<32x32xf32, #tpu.memory_space<vmem>>, vector<32x32xf32>
    %cst_42 = arith.constant dense<0.000000e+00> : vector<3x32xf32>
    %89 = tpu.matmul %87, %88, %cst_42 {dimension_numbers = #tpu.dot_dimension_numbers<[1], [0], [0], [1], [0, 0, 1, 1], [], []>} : vector<3x32xf32>, vector<32x32xf32>, vector<3x32xf32> -> vector<3x32xf32>
    %c0_43 = arith.constant 0 : index
    %c0_44 = arith.constant 0 : index
    %90 = vector.load %arg9[%c0_43, %c0_44] : memref<1x32xf32, #tpu.memory_space<vmem>>, vector<1x32xf32>
    %91 = vector.broadcast %90 : vector<1x32xf32> to vector<3x32xf32>
    %92 = arith.addf %89, %91 : vector<3x32xf32>
    %c0_45 = arith.constant 0 : index
    %c0_46 = arith.constant 0 : index
    %93 = vector.load %arg10[%c0_45, %c0_46] : memref<32x2xf32, #tpu.memory_space<vmem>>, vector<32x2xf32>
    %cst_47 = arith.constant dense<0.000000e+00> : vector<3x2xf32>
    %94 = tpu.matmul %92, %93, %cst_47 {dimension_numbers = #tpu.dot_dimension_numbers<[1], [0], [0], [1], [0, 0, 1, 1], [], []>} : vector<3x32xf32>, vector<32x2xf32>, vector<3x2xf32> -> vector<3x2xf32>
    %c0_48 = arith.constant 0 : index
    %c0_49 = arith.constant 0 : index
    %95 = vector.load %arg11[%c0_48, %c0_49] : memref<1x2xf32, #tpu.memory_space<vmem>>, vector<1x2xf32>
    %96 = vector.broadcast %95 : vector<1x2xf32> to vector<3x2xf32>
    %97 = arith.addf %94, %96 : vector<3x2xf32>
    %cst_50 = arith.constant dense<0xFF800000> : vector<3xf32>
    %98 = vector.multi_reduction <maximumf>, %97, %cst_50 [1] : vector<3x2xf32> to vector<3xf32>
    %99 = vector.shape_cast %98 : vector<3xf32> to vector<3x1xf32>
    %100 = vector.broadcast %99 : vector<3x1xf32> to vector<3x2xf32>
    %101 = arith.subf %97, %100 : vector<3x2xf32>
    %102 = math.exp %101 : vector<3x2xf32>
    %cst_51 = arith.constant dense<0.000000e+00> : vector<3xf32>
    %103 = vector.multi_reduction <add>, %102, %cst_51 [1] : vector<3x2xf32> to vector<3xf32>
    %104 = vector.shape_cast %103 : vector<3xf32> to vector<3x1xf32>
    %105 = math.log %104 : vector<3x1xf32>
    %106 = vector.broadcast %105 : vector<3x1xf32> to vector<3x2xf32>
    %107 = arith.subf %101, %106 : vector<3x2xf32>
    %c0_52 = arith.constant 0 : index
    %c0_53 = arith.constant 0 : index
    %c0_54 = arith.constant 0 : index
    %108 = vector.load %arg14[%c0_52, %c0_53, %c0_54] : memref<1x3x2xf32, #tpu.memory_space<vmem>>, vector<1x3x2xf32>
    %109 = vector.shape_cast %108 : vector<1x3x2xf32> to vector<3x2xf32>
    %110 = vector.shape_cast %107 : vector<3x2xf32> to vector<1x3x2xf32>
    tpu.vector_store %arg14[%c0_52, %c0_53, %c0_54], %110 {strides = array<i32>} : memref<1x3x2xf32, #tpu.memory_space<vmem>>, vector<1x3x2xf32>,
    return
  }
  func.func @transform_0(%arg0: i32, %arg1: i32) -> (i32, i32, i32) {
    %c0_i32 = arith.constant 0 : i32
    %c0_i32_0 = arith.constant 0 : i32
    %c0_i32_1 = arith.constant 0 : i32
    return %arg0, %c0_i32, %c0_i32_0 : i32, i32, i32
  }
  func.func @transform_1(%arg0: i32, %arg1: i32) -> (i32, i32, i32) {
    %c0_i32 = arith.constant 0 : i32
    %c0_i32_0 = arith.constant 0 : i32
    return %arg0, %arg1, %c0_i32 : i32, i32, i32
  }
  func.func @transform_2(%arg0: i32, %arg1: i32) -> (i32, i32) {
    %c0_i32 = arith.constant 0 : i32
    %c0_i32_0 = arith.constant 0 : i32
    %c0_i32_1 = arith.constant 0 : i32
    return %c0_i32, %c0_i32_0 : i32, i32
  }
  func.func @transform_3(%arg0: i32, %arg1: i32) -> (i32, i32) {
    %c0_i32 = arith.constant 0 : i32
    %c0_i32_0 = arith.constant 0 : i32
    %c0_i32_1 = arith.constant 0 : i32
    return %c0_i32, %c0_i32_0 : i32, i32
  }
  func.func @transform_4(%arg0: i32, %arg1: i32) -> (i32, i32) {
    %c0_i32 = arith.constant 0 : i32
    %c0_i32_0 = arith.constant 0 : i32
    %c0_i32_1 = arith.constant 0 : i32
    return %c0_i32, %c0_i32_0 : i32, i32
  }
  func.func @transform_5(%arg0: i32, %arg1: i32) -> (i32, i32) {
    %c0_i32 = arith.constant 0 : i32
    %c0_i32_0 = arith.constant 0 : i32
    %c0_i32_1 = arith.constant 0 : i32
    return %c0_i32, %c0_i32_0 : i32, i32
  }
  func.func @transform_6(%arg0: i32, %arg1: i32) -> (i32, i32) {
    %c0_i32 = arith.constant 0 : i32
    %c0_i32_0 = arith.constant 0 : i32
    %c0_i32_1 = arith.constant 0 : i32
    return %c0_i32, %c0_i32_0 : i32, i32
  }
  func.func @transform_7(%arg0: i32, %arg1: i32) -> (i32, i32) {
    %c0_i32 = arith.constant 0 : i32
    %c0_i32_0 = arith.constant 0 : i32
    %c0_i32_1 = arith.constant 0 : i32
    return %c0_i32, %c0_i32_0 : i32, i32
  }
  func.func @transform_8(%arg0: i32, %arg1: i32) -> (i32, i32) {
    %c0_i32 = arith.constant 0 : i32
    %c0_i32_0 = arith.constant 0 : i32
    %c0_i32_1 = arith.constant 0 : i32
    return %c0_i32, %c0_i32_0 : i32, i32
  }
  func.func @transform_9(%arg0: i32, %arg1: i32) -> (i32, i32) {
    %c0_i32 = arith.constant 0 : i32
    %c0_i32_0 = arith.constant 0 : i32
    %c0_i32_1 = arith.constant 0 : i32
    return %c0_i32, %c0_i32_0 : i32, i32
  }
  func.func @transform_10(%arg0: i32, %arg1: i32) -> (i32, i32) {
    %c0_i32 = arith.constant 0 : i32
    %c0_i32_0 = arith.constant 0 : i32
    %c0_i32_1 = arith.constant 0 : i32
    return %c0_i32, %c0_i32_0 : i32, i32
  }
  func.func @transform_11(%arg0: i32, %arg1: i32) -> (i32, i32) {
    %c0_i32 = arith.constant 0 : i32
    %c0_i32_0 = arith.constant 0 : i32
    %c0_i32_1 = arith.constant 0 : i32
    return %c0_i32, %c0_i32_0 : i32, i32
  }
  func.func @transform_12(%arg0: i32, %arg1: i32) -> (i32, i32, i32) {
    %c0_i32 = arith.constant 0 : i32
    %c0_i32_0 = arith.constant 0 : i32
    return %arg0, %arg1, %c0_i32 : i32, i32, i32
  }
}

</mosaic_0001>

<bundles_post_ra>
// kernel: tpu_custom_call.1
= control target key start
LH: loop header
LB: loop body
LE: loop exit
PB: predicated region body
PF: predicated region fallthrough
CT: control target
= control target key end

     0   :  { %17 = vsyncpa [#allocation6], 0  ;;  %s2420_s0 = inlined_call_operand.vmem [shape: f32[2,24,32], index: 0, kind: input, shape index: {}]   ;;  %s2421_s1 = inlined_call_operand.vmem [shape: f32[2,3,32], index: 1, kind: input, shape index: {}]   ;;  %s2422_s2 = inlined_call_operand.vmem [shape: f32[32,32], index: 2, kind: input, shape index: {}]   ;;  %s2423_s3 = inlined_call_operand.hbm [shape: f32[32,64], index: 3, kind: input, shape index: {}]   ;;  %s2424_s4 = inlined_call_operand.vmem [shape: f32[1,32], index: 4, kind: input, shape index: {}]   ;;  %s2425_s5 = inlined_call_operand.vmem [shape: f32[1,64], index: 5, kind: input, shape index: {}]   ;;  %s2426_s6 = inlined_call_operand.hbm [shape: f32[32,32], index: 6, kind: input, shape index: {}]   ;;  %s2427_s7 = inlined_call_operand.vmem [shape: f32[1,32], index: 7, kind: input, shape index: {}]   ;;  %s2428_s8 = inlined_call_operand.vmem [shape: f32[32,2], index: 8, kind: input, shape index: {}]   ;;  %s2429_s9 = inlined_call_operand.vmem [shape: f32[1,2], index: 9, kind: input, shape index: {}]   ;;  %s2430_s10 = inlined_call_operand.vmem [shape: f32[32,4], index: 10, kind: input, shape index: {}]   ;;  %s2431_s11 = inlined_call_operand.vmem [shape: f32[4,32], index: 11, kind: input, shape index: {}]   ;;  %s2432_s12 = inlined_call_operand.vmem [shape: f32[2,3,2], index: 12, kind: output, shape index: {}]  }
   0x1   :  { %18 = vsyncpa [#allocation8], 0  ;;  %s2143_s21 = smov 0   ;;  %s2145_s22 = smov 0  }
   0x2   :  { %s2147_s23 = smov 0  }
   0x3 LB: > { %2437 = sst [smem:[#allocation11_spill]] %s2064_s22  ;;  %s1666_s24 = sadd.s32 4294967295, %s2068_s23   ;;  %s2068_s23 = sphi %s2147_s23, %s24_s23   ;;  %s2064_s22 = sphi %s2145_s22, %s2445_s22   ;;  %s2060_s21 = sphi %s2143_s21, %s2444_s21  }
   0x4   : > { %s36_s25 = sadd.s32 1, %s2064_s22  ;;  %p1668_p1 = scmp.ge.s32.totalorder %s2068_s23, 1 }
   0x5   : > { %p38_p0 = scmp.ge.s32.totalorder %s36_s25, 2  ;;  %p333_p2 = scmp.lt.s32.totalorder %s2068_s23, 3 }
   0x6   : > { %p2168_p4 = scmp.eq.s32.totalorder %s1666_s24, 0  ;;  %s2070_s28 = smov [#allocation5]  }
   0x7   : > { %s2447_s25 = smov (%p38_p0, %s36_s25), 0  ;;  %p2164_p3 = pnand %p1668_p1, %p333_p2 }
   0x8   : > { %2438 = sst [smem:[#allocation12_spill]] %s2447_s25  ;;  %s348_s29 = sshll.u32 %s2070_s28, 4  ;;  %s349_s29 = int_to_ptr.vmem [resolvable:$true] %s348_s29 }
   0x9   : > { %s2439_s26 = scalar_select %p2164_p3, 1, 0 }
   0xa   : > { %s2440_s27 = scalar_select %p2168_p4, 1, 0 }
   0xb   : > { %p1917_p5 = pneg %p2164_p3  ;;  %s2071_s13 = smov [#allocation7]  }
   0xc   : > { %s367_s14 = sshll.u32 %s2071_s13, 4  ;;  %s1982_s17 = scalar_lea.hbm %s2423_s3, 512  ;;  %s2180_s14 = int_to_ptr.vmem [resolvable:$true] %s367_s14 }
   0xd   : > { %p2176_p6 = pnand %p2168_p4, %p1917_p5  ;;  %p1983_p7 = scmp.ne.s32.totalorder %s2423_s3, %s1982_s17 }
   0xe   : > { %p1989_p11 = scmp.lt.u32.totalorder %s1982_s17, %s2423_s3 }
   0xf   : > { %p1984_p8 = pneg %p2176_p6 }
  0x11   : > { %p1985_p9 = pnand %p1984_p8, %p1983_p7 }
  0x13   : > { %p1986_p10 = pneg %p1985_p9 }
  0x15   : > { %p1991_p12 = pnand %p1989_p11, %p1986_p10 }
  0x17   : > { %1994 = shalt.err (!%p1991_p12)
}
  0x18   : > { %s1995_s28 = scalar_lea.vmem %s349_s29, 512  ;;  %p2003_p2 = scmp.lt.s32.totalorder %s349_s29, %s349_s29 }
  0x19   : > { %p1996_p13 = scmp.ne.s32.totalorder %s349_s29, %s1995_s28  ;;  %p2004_p5 = scmp.lt.s32.totalorder %s1995_s28, %s1995_s28 }
  0x1b   : > { %p1998_p0 = pnand %p1996_p13, %p1984_p8  ;;  %p2005_p4 = por %p2004_p5, %p2003_p2 }
  0x1d   : > { %p1999_p1 = pneg %p1998_p0 }
  0x1f   : > { %p2006_p3 = pnand %p2005_p4, %p1999_p1 }
  0x21   : > { %2009 = shalt.err (!%p2006_p3)
}
  0x22   : > { %s2072_s13 = smov 128   ;;  %s2073_s15 = smov 8  }
  0x23   : > { %1920 = dma.hbm_to_vmem [thread:$0]  (!%p2176_p6), %s2423_s3, 512, %s349_s29, [#allocation6], %s2072_s13, %s2072_s13, %s2073_s15  }
  0x24   : > { %s2010_s20 = scalar_lea.hbm %s2426_s6, 512 }
  0x25   : > { %p2011_p7 = scmp.ne.s32.totalorder %s2426_s6, %s2010_s20  ;;  %p2017_p9 = scmp.lt.u32.totalorder %s2010_s20, %s2426_s6 }
  0x27   : > { %p2013_p3 = pnand %p2011_p7, %p1984_p8 }
  0x29   : > { %p2014_p4 = pneg %p2013_p3 }
  0x2b   : > { %p2019_p10 = pnand %p2017_p9, %p2014_p4 }
  0x2d   : > { %2022 = shalt.err (!%p2019_p10)
}
  0x2e   : > { %s2023_s29 = scalar_lea.vmem %s2180_s14, 512  ;;  %p2031_p0 = scmp.lt.s32.totalorder %s2180_s14, %s2180_s14 }
  0x2f   : > { %p2024_p11 = scmp.ne.s32.totalorder %s2180_s14, %s2023_s29  ;;  %p2032_p1 = scmp.lt.s32.totalorder %s2023_s29, %s2023_s29 }
  0x31   : > { %p2026_p12 = pnand %p2024_p11, %p1984_p8  ;;  %p2033_p2 = por %p2032_p1, %p2031_p0 }
  0x33   : > { %p2027_p13 = pneg %p2026_p12 }
  0x35   : > { %p2034_p5 = pnand %p2033_p2, %p2027_p13 }
  0x37   : > { %2037 = shalt.err (!%p2034_p5)
}
  0x38   : > { %1923 = dma.hbm_to_vmem [thread:$0]  (!%p2176_p6), %s2426_s6, 512, %s2180_s14, [#allocation8], %s2072_s13, %s2072_s13, %s2073_s15  }
  0x39   : > { %p2442_p7 = scmp.ne.s32.totalorder %s2439_s26, 0 }
  0x3a   : > { %p2443_p3 = scmp.ne.s32.totalorder (!%p2442_p7), %s2440_s27, 0 }
  0x3b   : > { %416 = sbr.rel (%p2442_p7) target bundleno = 1853 (0x73d), region = 68 }
  0x42   : > { %2051 = dma.done.wait (%p2443_p3), [#allocation6], 512  }
  0x43   : > { %2053 = vsyncadd (%p2443_p3), [#allocation6], 4294966784 }
  0x44   : > { %2055 = dma.done.wait (%p2443_p3), [#allocation8], 512  }
  0x45   : > { %2057 = vsyncadd (%p2443_p3), [#allocation8], 4294966784  ;;  %p471_p8 = scmp.lt.s32.totalorder %s2060_s21, 1  ;;  %v2074_v0 = vmov 0.0|0.0   ;;  %vm2075_vm0 = vmmov 0   ;;  %v2076_v1 = vmov 0.0   ;;  %v715_v24 = vlaneseq }
  0x46   : > { %1860 = vmatprep.subr.bf16.mxu0 %v2074_v0  ;;  %1866 = vmatprep.subr.bf16.mxu1 %v2074_v0  ;;  %v497_v2 = vld [vmem:[#allocation5] sm:$0xff]  ;;  %v498_v3 = vld [vmem:[#allocation5 + $0x8] sm:$0xff]  ;;  %v499_v4 = vld [vmem:[#allocation5 + $0x10] sm:$0xff]  ;;  %vm508_vm1 = vcmask 261120   ;;  %s2077_s29 = smov 96   ;;  %vm837_vm2 = vcmask 1043456  }
  0x47   : > { %1770 = vmatprep.mubr.msk.f32.mxu0 %vm2075_vm0, %v2076_v1  ;;  %1787 = vmatprep.mubr.msk.f32.mxu1 %vm2075_vm0, %v2076_v1  ;;  %s2449_s21 = smov (!%p471_p8, %s2060_s21), 1  ;;  %v1861_v5 = vpack.c.bf16 %v498_v3, %v497_v2  ;;  %v500_v6 = vld [vmem:[#allocation5 + $0x18] sm:$0xff]  ;;  %v617_v7 = vld [vmem:[%s2422_s2] sm:$0xff]  ;;  %v620_v11 = vld [vmem:[%s2422_s2 + $0x18] sm:$0xff]  ;;  %v716_v27 = vshrl.u32 %v715_v24, 7  ;;  %vm804_vm3 = vcmask 26624  }
  0x48   : > { %s1908_s26 = smul.u32 24, %s2449_s21  ;;  %v618_v8 = vld [vmem:[%s2422_s2 + $0x8] sm:$0xff]  ;;  %v619_v10 = vld [vmem:[%s2422_s2 + $0x10] sm:$0xff]  ;;  %s1676_s19 = sshll.u32 %s2449_s21, 2  ;;  %v1864_v12 = vpack.c.bf16 %v500_v6, %v499_v4  ;;  %v703_v18 = vld [vmem:[%s2430_s10] sm:$0xff]  ;;  %vm802_vm4 = vcmask 31744  }
  0x49   : > { %v1867_v9 = vpack.c.bf16 %v618_v8, %v617_v7  ;;  %1862 = vmatpush3.bf16.msra.mxu0 %v1861_v5  ;;  %v1870_v13 = vpack.c.bf16 %v620_v11, %v619_v10  ;;  %s482_s25 = scalar_lea.vmem %s2421_s1, %s1676_s19  ;;  %v704_v19 = vld [vmem:[%s2430_s10 + $0x8] sm:$0xff]  ;;  %v705_v21 = vld [vmem:[%s2430_s10 + $0x10] sm:$0xff]  ;;  %v706_v22 = vld [vmem:[%s2430_s10 + $0x18] sm:$0xff]  ;;  %v1153_v33 = vsub.s32 2, %v716_v27  ;;  %v717_v35 = vsub.s32 0, %v716_v27 }
  0x4a   : > { %1863 = vmatprep.subr.bf16.mxu0 %v2074_v0  ;;  %s475_s28 = scalar_lea.vmem %s2420_s0, %s1908_s26  ;;  %v616_v15 = vld [vmem:[%s482_s25] sm:$0x7]  ;;  %v2287_v20 = vpack.c.bf16 %v704_v19, %v703_v18  ;;  %v2297_v23 = vpack.c.bf16 %v706_v22, %v705_v21  ;;  %v939_v42 = vsub.s32 1, %v716_v27  ;;  %vm919_vm5 = vcmask 256000   ;;  %s489_s25 = scalar_lea.vmem %s2432_s12, %s1676_s19 }
  0x4b   : > { %1868 = vmatpush3.bf16.msra.mxu1 %v1867_v9  ;;  %v494_v14 = vld [vmem:[%s475_s28] sm:$0xff]  ;;  %v495_v16 = vld [vmem:[%s475_s28 + $0x8] sm:$0xff]  ;;  %v496_v17 = vld [vmem:[%s475_s28 + $0x10] sm:$0xff]  ;;  %vm928_vm6 = vcmask 253952   ;;  %vm1527_vm7 = vcmask 10240  }
  0x4c   : > { %1869 = vmatprep.subr.bf16.mxu1 %v2074_v0  ;;  %v1678_v25 = vld [vmem:[%s2425_s5] ss:$0 sm:$0xff] }
  0x4d   : > { %1865 = vmatpush3.bf16.msra.mxu0 %v1864_v12  ;;  %v1682_v26 = vld [vmem:[%s2424_s4] ss:$0 sm:$0xff] }
  0x4e   : > { %v2326_v58 = vld [vmem:[%s2431_s11] sm:$0xf] }
  0x4f   : > { %1871 = vmatpush3.bf16.msra.mxu1 %v1870_v13  ;;  %1801 = vmatprep.subr.msk.mxu0 %vm837_vm2, %v2326_v58 }
  0x50   : > { %1771 = vmatmul.mubr.msk.f32.vlgmr.msra.gmra.mrb[0].mxu0 %vm508_vm1, %v494_v14  ;;  %1873 = vmatprep.subr.bf16.mxu1 %v2287_v20 }
  0x51   : > { %1773 = vmatprep.mubr.msk.f32.mxu0 %vm2075_vm0, %v2076_v1  ;;  %1802 = vmatpush3.msk.msra.mxu0 %vm837_vm2, %v2326_v58 }
  0x52   : > { %1788 = vmatmul.mubr.msk.f32.vlgmr.msra.gmra.mrb[0].mxu1 %vm508_vm1, %v616_v15  ;;  %1817 = vmatprep.subr.msk.mxu0 %vm837_vm2, %v2326_v58 }
  0x53   : > { %1875 = vmatpush3.bf16.msra.mxu1 %v2287_v20 }
  0x54   : > { %1774 = vmatmul.mubr.msk.f32.gmra.mrb[2].mxu0 %vm508_vm1, %v495_v16  ;;  %1877 = vmatprep.subr.bf16.mxu1 %v2297_v23 }
  0x55   : > { %1776 = vmatprep.mubr.msk.f32.mxu0 %vm2075_vm0, %v2076_v1 }
  0x57   : > { %1879 = vmatpush3.bf16.msra.mxu1 %v2297_v23 }
  0x58   : > { %1777 = vmatmul.mubr.msk.f32.gmra.mrb[4].mxu0 %vm508_vm1, %v496_v17  ;;  %1881 = vmatprep.subr.bf16.mxu1 %v2287_v20 }
 0x123   : > { %v584_v28 = vpop.f32.mrb[0].mxu0 }
 0x124   : > { %v585_v29 = vadd.f32 %v1678_v25, %v584_v28  ;;  %v1772_v30 = vpop.f32.mrb[1].mxu0 }
 0x125   : > { %v698_v31 = vpop.f32.mrb[0].mxu1 }
 0x126   : > { %v699_v32 = vadd.f32 %v1682_v26, %v698_v31  ;;  %v1789_v34 = vpop.f32.mrb[1].mxu1  ;;  %598 = vst.msk [vmem:[#allocation2] sm:$0xff] %vm508_vm1, %v585_v29  ;;  %604 = vrot.lane.b32.xlu0 %v585_v29, %s2077_s29 }
 0x127   : > { %v589_v36 = vpop.f32.mrb[2].mxu0 }
 0x128   : > { %v702_v37 = vmul.f32 0.35355338, %v699_v32  ;;  %v590_v38 = vadd.f32 %v1678_v25, %v589_v36  ;;  %v1775_v39 = vpop.f32.mrb[3].mxu0 }
 0x12a   : > { %v2309_v40 = vrot.slane %v702_v37, %v1153_v33  ;;  %599 = vst.msk [vmem:[#allocation2 + $0x8] sm:$0xff] %vm508_vm1, %v590_v38  ;;  %v718_v41 = vrot.slane %v702_v37, %v717_v35  ;;  %606 = vrot.lane.b32.xlu0 %v590_v38, %s2077_s29  ;;  %v940_v47 = vrot.slane %v702_v37, %v939_v42 }
 0x12b   : > { %v594_v43 = vpop.f32.mrb[4].mxu0 }
 0x12c   : > { %v595_v44 = vadd.f32 %v1678_v25, %v594_v43  ;;  %v1778_v45 = vpop.f32.mrb[5].mxu0 }
 0x12d   : > { %v710_v46 = vld [vmem:[#allocation2] sm:$0xff] }
 0x12e   : > { %600 = vst.msk [vmem:[#allocation2 + $0x10] sm:$0xff] %vm508_vm1, %v595_v44  ;;  %608 = vrot.lane.b32.xlu1 %v595_v44, %s2077_s29  ;;  %v719_v48 = vmul.f32 %v718_v41, %v710_v46 }
 0x130   : > { %1798 = vmatprep.mubr.msk.f32.mxu1 %vm508_vm1, %v719_v48 }
 0x131   : > { %v711_v49 = vld [vmem:[#allocation2 + $0x8] sm:$0x7]  ;;  %v1690_v53 = vld [vmem:[#allocation2 + $0xd] sm:$0x7] }
 0x132   : > { %v1689_v50 = vld [vmem:[#allocation2 + $0x5] sm:$0xff]  ;;  %v720_v51 = vmul.f32 %v718_v41, %v711_v49  ;;  %v942_v54 = vmul.f32 %v1690_v53, %v940_v47 }
 0x133   : > { %v941_v52 = vmul.f32 %v1689_v50, %v940_v47 }
 0x134   : > { %1799 = vmatmul.mubr.msk.f32.vlgmr.msra.gmra.mrb[2].mxu1 %vm508_vm1, %v720_v51 }
 0x135   : > { %1883 = vmatpush3.bf16.msra.mxu1 %v2287_v20  ;;  %1814 = vmatprep.mubr.msk.f32.mxu1 %vm508_vm1, %v941_v52 }
 0x136   : > { %1885 = vmatprep.subr.bf16.mxu1 %v2297_v23 }
 0x139   : > { %1887 = vmatpush3.bf16.msra.mxu1 %v2297_v23 }
 0x13a   : > { %1833 = vmatprep.subr.msk.mxu1 %vm837_vm2, %v2326_v58 }
 0x13c   : > { %1815 = vmatmul.mubr.msk.f32.vlgmr.msra.gmra.mrb[4].mxu1 %vm508_vm1, %v942_v54 }
 0x13d   : > { %1834 = vmatpush3.msk.msra.mxu1 %vm837_vm2, %v2326_v58 }
 0x13e   : > { %1896 = vmatprep.subr.bf16.mxu1 %v2074_v0 }
 0x198   : > { %v605_v55 = vpop.permute.xlu0 %604 }
 0x199   : > { %613 = vst.msk [vmem:[#allocation3] sm:$0xff] %vm508_vm1, %v605_v55 }
 0x19c   : > { %v607_v56 = vpop.permute.xlu0 %606 }
 0x19d   : > { %614 = vst.msk [vmem:[#allocation3 + $0x8] sm:$0xff] %vm508_vm1, %v607_v56  ;;  %v1698_v56 = vld [vmem:[#allocation2 + $0xa] sm:$0xff] }
 0x1a0   : > { %v609_v57 = vpop.permute.xlu1 %608 }
 0x1a1   : > { %615 = vst.msk [vmem:[#allocation3 + $0x10] sm:$0xff] %vm508_vm1, %v609_v57 }
 0x207   : > { %v1800_v59 = vpop.f32.mrb[2].mxu1 }
 0x208   : > { %v805_v60 = vsel %vm804_vm3, %v1800_v59, -inf  ;;  %v793_v61 = vpop.f32.mrb[3].mxu1 }
 0x209   : > { %v803_v62 = vsel %vm802_vm4, %v793_v61, -inf }
 0x20a   : > { %v806_v63 = vmax.f32 %v803_v62, %v805_v60  ;;  %v1155_v60 = vmul.f32 %v1698_v56, %v2309_v40  ;;  %v714_v62 = vld [vmem:[#allocation3 + $0x8] sm:$0x7] }
 0x20c   : > { %v807_v2 = vrot.slane %v806_v63, 4 }
 0x20e   : > { %v808_v3 = vmax.f32 %v806_v63, %v807_v2  ;;  %v713_v2 = vld [vmem:[#allocation3] sm:$0xff] }
 0x20f   : > { %v1816_v4 = vpop.f32.mrb[4].mxu1 }
 0x210   : > { %v809_v5 = vrot.slane %v808_v3, 2  ;;  %v1025_v6 = vsel %vm804_vm3, %v1816_v4, -inf  ;;  %v1015_v7 = vpop.f32.mrb[5].mxu1 }
 0x211   : > { %v1024_v8 = vsel %vm802_vm4, %v1015_v7, -inf }
 0x212   : > { %v810_v9 = vmax.f32 %v808_v3, %v809_v5  ;;  %v1026_v10 = vmax.f32 %v1024_v8, %v1025_v6 }
 0x214   : > { %v811_v11 = vrot.slane %v810_v9, 1  ;;  %v1027_v12 = vrot.slane %v1026_v10, 4 }
 0x216   : > { %v812_v13 = vmax.f32 %v810_v9, %v811_v11  ;;  %v1028_v14 = vmax.f32 %v1026_v10, %v1027_v12  ;;  %v1691_v11 = vld [vmem:[#allocation3 + $0x5] sm:$0xff] }
 0x218   : > { %v813_v15 = vsub.f32 %v793_v61, %v812_v13  ;;  %v814_v16 = vsub.f32 %v1800_v59, %v812_v13  ;;  %v1029_v17 = vrot.slane %v1028_v14, 2  ;;  %v1699_v61 = vld [vmem:[#allocation2 + $0x12] sm:$0x7] }
 0x21a   : > { %v815_v18 = vmul.f32 1.442695, %v813_v15  ;;  %v817_v19 = vmul.f32 1.442695, %v814_v16  ;;  %v1030_v21 = vmax.f32 %v1028_v14, %v1029_v17 }
 0x21c   : > { %1960 = vpow2.f32 %v815_v18  ;;  %v1031_v22 = vrot.slane %v1030_v21, 1 }
 0x21d   : > { %1962 = vpow2.f32 %v817_v19 }
 0x21e   : > { %v1032_v24 = vmax.f32 %v1030_v21, %v1031_v22 }
 0x220   : > { %v1033_v25 = vsub.f32 %v1015_v7, %v1032_v24  ;;  %v1034_v26 = vsub.f32 %v1816_v4, %v1032_v24  ;;  %v1692_v7 = vld [vmem:[#allocation3 + $0xd] sm:$0x7] }
 0x222   : > { %v1035_v27 = vmul.f32 1.442695, %v1033_v25  ;;  %v1037_v28 = vmul.f32 1.442695, %v1034_v26 }
 0x224   : > { %1964 = vpow2.f32 %v1035_v27 }
 0x225   : > { %1966 = vpow2.f32 %v1037_v28 }
 0x226   : > { %v1961_v29 = vpop.eup %1960 }
 0x227   : > { %v1963_v30 = vpop.eup %1962  ;;  %v819_v31 = vsel %vm802_vm4, %v1961_v29, 0.0 }
 0x228   : > { %v820_v32 = vsel %vm804_vm3, %v1963_v30, 0.0 }
 0x229   : > { %v821_v33 = vadd.f32 %v820_v32, %v819_v31 }
 0x22b   : > { %v822_v34 = vrot.slane %v821_v33, 4 }
 0x22d   : > { %v823_v35 = vadd.f32 %v822_v34, %v821_v33 }
 0x22e   : > { %v1965_v36 = vpop.eup %1964 }
 0x22f   : > { %v1967_v37 = vpop.eup %1966  ;;  %v824_v38 = vrot.slane %v823_v35, 2  ;;  %v1039_v39 = vsel %vm802_vm4, %v1965_v36, 0.0 }
 0x230   : > { %v1040_v41 = vsel %vm804_vm3, %v1967_v37, 0.0 }
 0x231   : > { %v825_v42 = vadd.f32 %v824_v38, %v823_v35  ;;  %v1041_v43 = vadd.f32 %v1040_v41, %v1039_v39 }
 0x233   : > { %v826_v44 = vrot.slane %v825_v42, 1  ;;  %v1042_v45 = vrot.slane %v1041_v43, 4 }
 0x235   : > { %v1043_v46 = vadd.f32 %v1042_v45, %v1041_v43  ;;  %v827_v47 = vadd.f32 %v826_v44, %v825_v42 }
 0x237   : > { %v1044_v48 = vrot.slane %v1043_v46, 2  ;;  %1968 = vrcp.f32 %v827_v47 }
 0x239   : > { %v1045_v49 = vadd.f32 %v1044_v48, %v1043_v46 }
 0x23b   : > { %v1046_v50 = vrot.slane %v1045_v49, 1 }
 0x23d   : > { %v1047_v51 = vadd.f32 %v1046_v50, %v1045_v49 }
 0x23f   : > { %1970 = vrcp.f32 %v1047_v51 }
 0x241   : > { %v1969_v52 = vpop.eup %1968 }
 0x242   : > { %v829_v53 = vmul.f32 %v1969_v52, %v1961_v29  ;;  %v830_v54 = vmul.f32 %v1969_v52, %v1963_v30 }
 0x244   : > { %1803 = vmatprep.mubr.msk.f32.mxu0 %vm802_vm4, %v829_v53 }
 0x245   : > { %1804 = vmatmul.mubr.msk.f32.vlgmr.msra.gmra.mrb[6].mxu0 %vm802_vm4, %v830_v54 }
 0x246   : > { %1818 = vmatpush3.msk.msra.mxu0 %vm837_vm2, %v2326_v58  ;;  %v1156_v58 = vmul.f32 %v1699_v61, %v2309_v40  ;;  %v1360_v61 = vld [vmem:[#allocation7 + $0x8] sm:$0xff] }
 0x247   : > { %1889 = vmatprep.subr.bf16.mxu0 %v2287_v20 }
 0x249   : > { %v1971_v55 = vpop.eup %1970 }
 0x24a   : > { %v1049_v57 = vmul.f32 %v1971_v55, %v1965_v36  ;;  %v1050_v59 = vmul.f32 %v1971_v55, %v1967_v37 }
 0x24c   : > { %1819 = vmatprep.mubr.msk.f32.mxu0 %vm802_vm4, %v1049_v57 }
 0x24d   : > { %1820 = vmatmul.mubr.msk.f32.vlgmr.msra.gmra.mrb[8].mxu0 %vm802_vm4, %v1050_v59 }
 0x24e   : > { %1891 = vmatpush3.bf16.msra.mxu0 %v2287_v20  ;;  %1830 = vmatprep.mubr.msk.f32.mxu0 %vm508_vm1, %v1155_v60  ;;  %v1359_v60 = vld [vmem:[#allocation7] sm:$0xff] }
 0x24f   : > { %1893 = vmatprep.subr.bf16.mxu0 %v2297_v23 }
 0x252   : > { %1895 = vmatpush3.bf16.msra.mxu0 %v2297_v23 }
 0x253   : > { %1902 = vmatprep.subr.bf16.mxu0 %v2074_v0 }
 0x255   : > { %1831 = vmatmul.mubr.msk.f32.vlgmr.msra.gmra.mrb[10].mxu0 %vm508_vm1, %v1156_v58  ;;  %v1897_v58 = vpack.c.bf16 %v1360_v61, %v1359_v60 }
 0x256   : > { %1857 = vmatprep.mubr.msk.f32.mxu0 %vm2075_vm0, %v2076_v1 }
 0x318   : > { %v1805_v63 = vpop.f32.mrb[6].mxu0 }
 0x319   : > { %v917_v20 = vmul.f32 %v1805_v63, %v714_v62  ;;  %v907_v3 = vpop.f32.mrb[7].mxu0  ;;  %v1361_v62 = vld [vmem:[#allocation7 + $0x10] sm:$0xff]  ;;  %v1362_v63 = vld [vmem:[#allocation7 + $0x18] sm:$0xff] }
 0x31a   : > { %v916_v4 = vmul.f32 %v907_v3, %v713_v2  ;;  %v1443_v2 = vld [vmem:[%s2428_s8] sm:$0xff]  ;;  %v1444_v3 = vld [vmem:[%s2428_s8 + $0x8] sm:$0xff] }
 0x31b   : > { %v920_v5 = vsel %vm919_vm5, %v917_v20, 0.0  ;;  %v1900_v20 = vpack.c.bf16 %v1362_v63, %v1361_v62 }
 0x31c   : > { %v918_v23 = vsel %vm508_vm1, %v916_v4, 0.0  ;;  %v1903_v4 = vpack.c.bf16 %v1444_v3, %v1443_v2 }
 0x31d   : > { %v921_v6 = vadd.f32 %v920_v5, %v918_v23 }
 0x31e   : > { %1904 = vmatpush3.bf16.msra.mxu0 %v1903_v4 }
 0x31f   : > { %v922_v40 = vrot.slane %v921_v6, 4  ;;  %1905 = vmatprep.subr.bf16.mxu0 %v2074_v0 }
 0x320   : > { %v1821_v8 = vpop.f32.mrb[8].mxu0 }
 0x321   : > { %v923_v9 = vadd.f32 %v922_v40, %v921_v6  ;;  %v1133_v10 = vmul.f32 %v1821_v8, %v1692_v7  ;;  %v1123_v12 = vpop.f32.mrb[9].mxu0  ;;  %v1700_v6 = vld [vmem:[#allocation3 + $0xa] sm:$0xff] }
 0x322   : > { %v1132_v13 = vmul.f32 %v1691_v11, %v1123_v12 }
 0x323   : > { %v924_v14 = vrot.slane %v923_v9, 2  ;;  %v1135_v15 = vsel %vm919_vm5, %v1133_v10, 0.0 }
 0x324   : > { %v1134_v16 = vsel %vm508_vm1, %v1132_v13, 0.0 }
 0x325   : > { %v925_v17 = vadd.f32 %v924_v14, %v923_v9  ;;  %v1136_v18 = vadd.f32 %v1135_v15, %v1134_v16 }
 0x327   : > { %v926_v19 = vrot.slane %v925_v17, 1  ;;  %v1137_v21 = vrot.slane %v1136_v18, 4 }
 0x328   : > { %v1832_v22 = vpop.f32.mrb[10].mxu0 }
 0x329   : > { %v927_v24 = vadd.f32 %v926_v19, %v925_v17  ;;  %v1138_v25 = vadd.f32 %v1137_v21, %v1136_v18  ;;  %v1239_v26 = vsel %vm804_vm3, %v1832_v22, -inf  ;;  %v1229_v27 = vpop.f32.mrb[11].mxu0  ;;  %v1445_v17 = vld [vmem:[%s2428_s8 + $0x10] sm:$0xff]  ;;  %v1446_v18 = vld [vmem:[%s2428_s8 + $0x18] sm:$0xff]  ;;  %v1707_v21 = vld [vmem:[%s2427_s7] ss:$0 sm:$0xff] }
 0x32a   : > { %v1238_v28 = vsel %vm802_vm4, %v1229_v27, -inf  ;;  %v1906_v19 = vpack.c.bf16 %v1446_v18, %v1445_v17 }
 0x32b   : > { %929 = vst.msk [vmem:[#allocation4] sm:$0x1] %vm928_vm6, %v927_v24  ;;  %v1139_v29 = vrot.slane %v1138_v25, 2  ;;  %v1240_v30 = vmax.f32 %v1238_v28, %v1239_v26  ;;  %v1709_v26 = vld [vmem:[%s2429_s9] ss:$0 sm:$0xff] }
 0x32c   : > { %1907 = vmatpush3.bf16.msra.mxu0 %v1906_v19 }
 0x32d   : > { %v1140_v31 = vadd.f32 %v1139_v29, %v1138_v25  ;;  %v1241_v32 = vrot.slane %v1240_v30, 4 }
 0x32f   : > { %v1141_v33 = vrot.slane %v1140_v31, 1  ;;  %v1242_v34 = vmax.f32 %v1240_v30, %v1241_v32 }
 0x331   : > { %v1142_v35 = vadd.f32 %v1141_v33, %v1140_v31  ;;  %v1243_v36 = vrot.slane %v1242_v34, 2 }
 0x333   : > { %1143 = vst.msk [vmem:[#allocation4 + $0x1] sm:$0x1] %vm928_vm6, %v1142_v35  ;;  %v1244_v37 = vmax.f32 %v1242_v34, %v1243_v36 }
 0x335   : > { %v1245_v38 = vrot.slane %v1244_v37, 1 }
 0x337   : > { %v1246_v39 = vmax.f32 %v1244_v37, %v1245_v38 }
 0x339   : > { %v1247_v41 = vsub.f32 %v1229_v27, %v1246_v39  ;;  %v1248_v42 = vsub.f32 %v1832_v22, %v1246_v39 }
 0x33b   : > { %v1249_v43 = vmul.f32 1.442695, %v1247_v41  ;;  %v1251_v44 = vmul.f32 1.442695, %v1248_v42 }
 0x33d   : > { %1972 = vpow2.f32 %v1249_v43 }
 0x33e   : > { %1974 = vpow2.f32 %v1251_v44 }
 0x347   : > { %v1973_v45 = vpop.eup %1972 }
 0x348   : > { %v1975_v46 = vpop.eup %1974  ;;  %v1253_v47 = vsel %vm802_vm4, %v1973_v45, 0.0 }
 0x349   : > { %v1254_v48 = vsel %vm804_vm3, %v1975_v46, 0.0 }
 0x34a   : > { %v1255_v49 = vadd.f32 %v1254_v48, %v1253_v47 }
 0x34c   : > { %v1256_v50 = vrot.slane %v1255_v49, 4 }
 0x34e   : > { %v1257_v51 = vadd.f32 %v1256_v50, %v1255_v49 }
 0x350   : > { %v1258_v52 = vrot.slane %v1257_v51, 2 }
 0x352   : > { %v1259_v53 = vadd.f32 %v1258_v52, %v1257_v51 }
 0x354   : > { %v1260_v54 = vrot.slane %v1259_v53, 1 }
 0x356   : > { %v1261_v55 = vadd.f32 %v1260_v54, %v1259_v53 }
 0x358   : > { %1976 = vrcp.f32 %v1261_v55 }
 0x362   : > { %v1977_v56 = vpop.eup %1976 }
 0x363   : > { %v1263_v57 = vmul.f32 %v1977_v56, %v1973_v45  ;;  %v1264_v59 = vmul.f32 %v1977_v56, %v1975_v46 }
 0x365   : > { %1835 = vmatprep.mubr.msk.f32.mxu1 %vm802_vm4, %v1263_v57 }
 0x366   : > { %1836 = vmatmul.mubr.msk.f32.vlgmr.msra.gmra.mrb[6].mxu1 %vm802_vm4, %v1264_v59 }
 0x367   : > { %1846 = vmatprep.mubr.msk.f32.mxu1 %vm2075_vm0, %v2076_v1  ;;  %1898 = vmatpush3.bf16.msra.mxu1 %v1897_v58  ;;  %v1701_v1 = vld [vmem:[#allocation3 + $0x12] sm:$0x7] }
 0x368   : > { %1899 = vmatprep.subr.bf16.mxu1 %v2074_v0 }
 0x36b   : > { %1901 = vmatpush3.bf16.msra.mxu1 %v1900_v20 }
 0x439   : > { %v1837_v5 = vpop.f32.mrb[6].mxu1 }
 0x43a   : > { %v1347_v23 = vmul.f32 %v1837_v5, %v1701_v1  ;;  %v1337_v40 = vpop.f32.mrb[7].mxu1 }
 0x43b   : > { %v1346_v7 = vmul.f32 %v1700_v6, %v1337_v40 }
 0x43c   : > { %v1349_v8 = vsel %vm919_vm5, %v1347_v23, 0.0 }
 0x43d   : > { %v1348_v9 = vsel %vm508_vm1, %v1346_v7, 0.0 }
 0x43e   : > { %v1350_v10 = vadd.f32 %v1349_v8, %v1348_v9 }
 0x440   : > { %v1351_v11 = vrot.slane %v1350_v10, 4 }
 0x442   : > { %v1352_v12 = vadd.f32 %v1351_v11, %v1350_v10 }
 0x444   : > { %v1353_v13 = vrot.slane %v1352_v12, 2 }
 0x446   : > { %v1354_v14 = vadd.f32 %v1353_v13, %v1352_v12 }
 0x448   : > { %v1355_v15 = vrot.slane %v1354_v14, 1 }
 0x44a   : > { %v1356_v16 = vadd.f32 %v1355_v15, %v1354_v14 }
 0x44c   : > { %1357 = vst.msk [vmem:[#allocation4 + $0x2] sm:$0x1] %vm928_vm6, %v1356_v16 }
 0x453   : > { %v1358_v0 = vld [vmem:[#allocation4] sm:$0x7] }
 0x454   : > { %1847 = vmatmul.mubr.msk.f32.vlgmr.msra.gmra.mrb[8].mxu1 %vm508_vm1, %v1358_v0 }
 0x527   : > { %v1439_v22 = vpop.f32.mrb[8].mxu1 }
 0x528   : > { %v1440_v24 = vadd.f32 %v1707_v21, %v1439_v22  ;;  %v1848_v25 = vpop.f32.mrb[9].mxu1 }
 0x52a   : > { %1858 = vmatmul.mubr.msk.f32.vlgmr.msra.gmra.mrb[12].mxu0 %vm508_vm1, %v1440_v24 }
 0x5fd   : > { %v1523_v27 = vpop.f32.mrb[12].mxu0 }
 0x5fe   : > { %v1524_v28 = vadd.f32 %v1709_v26, %v1523_v27  ;;  %v1859_v29 = vpop.f32.mrb[13].mxu0 }
 0x600   : > { %v1528_v30 = vsel %vm1527_vm7, %v1524_v28, -inf }
 0x601   : > { %1529 = vmax.xlane.f32.xlu1 %v1528_v30 }
 0x68e   : > { %v1530_v31 = vpop.xlane.xlu1 %1529 }
 0x68f   : > { %v1531_v32 = vsub.f32 %v1524_v28, %v1530_v31 }
 0x691   : > { %v1532_v33 = vmul.f32 1.442695, %v1531_v32 }
 0x693   : > { %1978 = vpow2.f32 %v1532_v33 }
 0x69d   : > { %v1979_v34 = vpop.eup %1978 }
 0x69e   : > { %v1534_v35 = vsel %vm1527_vm7, %v1979_v34, 0.0 }
 0x69f   : > { %1535 = vadd.xlane.f32.xlu0 %v1534_v35 }
 0x72c   : > { %v1536_v36 = vpop.xlane.xlu0 %1535 }
 0x72d   : > { %1980 = vlog2.f32 %v1536_v36 }
 0x737   : > { %v1981_v37 = vpop.eup %1980 }
 0x738   : > { %v1538_v38 = vmul.f32 0.6931472, %v1981_v37 }
 0x73a   : > { %v1539_v39 = vsub.f32 %v1531_v32, %v1538_v38 }
 0x73c   : > { %1540 = vst.msk [vmem:[%s489_s25] sm:$0x7] %vm1527_vm7, %v1539_v39 }
 0x73d PF: > { %s24_s23 = sadd.s32 1, %s2068_s23   ;;  %s2444_s21 = sld [smem:[#allocation11_spill]] }
 0x73e   : > { %p21_p6 = scmp.ge.s32.totalorder %s24_s23, 4   ;;  %s2445_s22 = sld [smem:[#allocation12_spill]] }
 0x740   :  { %23 = sbr.rel (!%p21_p6) target bundleno = 3 (0x3), region = 120 }
 0x747   :  { %1566 = vsyncpa [#allocation6], 1 }
 0x748   :  { %1568 = vsyncpa [#allocation6 + $0x1], 1 }
 0x749   :  { %1569 = vsyncpa [#allocation8], 1 }

</bundles_post_ra>
